<compile_context>
chip_gen: v6e
topology: v6e:2x2x1
jax: 0.10.0
libtpu: 0.0.40
codegen_flags: <defaults>
</compile_context>

<pallas_src>
import math

import jax
import jax.numpy as jnp
from jax import lax
from jax.experimental import pallas as pl
from jax.experimental.pallas import tpu as pltpu

VERY_SMALL_NUMBER = 1e-12
LANE = 128
NUM_SPLITS = 2          # leading "parallel" axis -> per-core partials on v7x megacore
DEFAULT_TILE_N = 512    # ~85% of HBM roofline per measured tiled data; fits all gens


# --------------------------------------------------------------------------- #
# Kernels
# --------------------------------------------------------------------------- #
def _hop0_kernel(x_ref, adj_ref, w_ref, part_ref):
    """Hop 0 front half: accumulate adj_tile^T @ (x_tile @ W0) over node tiles."""
    @pl.when(pl.program_id(1) == 0)
    def _():
        part_ref[...] = jnp.zeros_like(part_ref)

    support = jnp.dot(x_ref[...], w_ref[...],
                      preferred_element_type=jnp.float32)           # (TILE_N, H) f32
    # adj_tile^T @ support  (contract over the node dim of both operands)
    part_ref[...] += lax.dot_general(
        adj_ref[...], support.astype(jnp.bfloat16),
        dimension_numbers=(((0,), (0,)), ((), ())),
        preferred_element_type=jnp.float32)                          # (A_pad, H)


def _hop_mid_kernel(adj_ref, invr_ref, t_ref, w_ref, part_ref):
    """Fuses hop l-1 back half with hop l front half, per node tile:
         h = relu(inv_row * (adj @ t_prev));  s = h @ W_l;
         partial += adj^T @ s   (contraction over node tiles).
    """
    @pl.when(pl.program_id(1) == 0)
    def _():
        part_ref[...] = jnp.zeros_like(part_ref)

    adj = adj_ref[...]                                               # bf16 (TILE_N, A_pad)
    h = jnp.dot(adj, t_ref[...], preferred_element_type=jnp.float32)  # (TILE_N, H_in)
    h = jnp.maximum(h * invr_ref[...], 0.0)                          # relu(inv_row * .)
    # TODO(synk): inter-hop dropout omitted (eval/inference mode -> identity).
    s = jnp.dot(h.astype(jnp.bfloat16), w_ref[...],
                preferred_element_type=jnp.float32)                  # (TILE_N, H_out)
    part_ref[...] += lax.dot_general(
        adj, s.astype(jnp.bfloat16),
        dimension_numbers=(((0,), (0,)), ((), ())),
        preferred_element_type=jnp.float32)                          # (A_pad, H_out)


def _final_kernel(adj_ref, invr_ref, t_ref, o_ref):
    """Last hop back half: out_tile = inv_row * (adj_tile @ t_last), no relu."""
    out = jnp.dot(adj_ref[...], t_ref[...], preferred_element_type=jnp.float32)
    o_ref[...] = (out * invr_ref[...]).astype(o_ref.dtype)


# --------------------------------------------------------------------------- #
# Wrapper
# --------------------------------------------------------------------------- #
def _round_up(v, m):
    return ((v + m - 1) // m) * m


def _pad2(a, rows, cols):
    return jnp.zeros((rows, cols), a.dtype).at[:a.shape[0], :a.shape[1]].set(a)


def _vmem_limit(per_tile_bytes, resident_bytes):
    # double-buffered streamed tiles + resident operands/accumulators + slack
    est = 2 * per_tile_bytes + resident_bytes + (8 << 20)
    return int(min(48 << 20, max(est, 16 << 20)))


def _cost(flops, bytes_accessed):
    return pl.CostEstimate(flops=int(flops), transcendentals=0,
                           bytes_accessed=int(bytes_accessed))


def anchor_gcn_forward(x, node_anchor_adj, weights, *, tile_n=DEFAULT_TILE_N):
    """AnchorGCN forward (anchor_mp=True, bias=False, batch_norm=False, eval)."""
    N, nfeat = x.shape
    A = node_anchor_adj.shape[1]
    num_layers = len(weights)
    nclass = weights[-1].shape[1]

    # ---- static padded shapes ------------------------------------------------
    tile_n = max(8, min(int(tile_n), _round_up(N, LANE)))
    n_pad = _round_up(N, tile_n * NUM_SPLITS)
    num_tiles = n_pad // tile_n
    tiles_per_split = num_tiles // NUM_SPLITS
    a_pad = _round_up(A, LANE)
    dims = [w.shape[0] for w in weights] + [nclass]
    dims_pad = [_round_up(d, LANE) for d in dims]
    f_pad = dims_pad[0]
    c_pad = dims_pad[-1]

    # ---- normalization vectors (exact f32, from the original adjacency) ------
    adj32 = node_anchor_adj.astype(jnp.float32)
    row_sum = jnp.sum(adj32, axis=1, keepdims=True)          # (N, 1)  torch dim=-1
    col_sum = jnp.sum(adj32, axis=0, keepdims=True)          # (1, A)  torch dim=-2
    inv_row = 1.0 / jnp.maximum(row_sum, VERY_SMALL_NUMBER)
    inv_col = 1.0 / jnp.maximum(col_sum, VERY_SMALL_NUMBER)
    inv_row_p = _pad2(inv_row, n_pad, 1)                     # (N_pad, 1), zeros in pad
    inv_col_p = _pad2(inv_col.T, a_pad, 1)                   # (A_pad, 1), zeros in pad

    # ---- bf16 streamed operands / resident padded bf16 weights ---------------
    x_bf = _pad2(x.astype(jnp.bfloat16), n_pad, f_pad)
    adj_bf = _pad2(node_anchor_adj.astype(jnp.bfloat16), n_pad, a_pad)
    w_bf = [_pad2(w.astype(jnp.bfloat16), dims_pad[i], dims_pad[i + 1])
            for i, w in enumerate(weights)]

    row_map = lambda c, i: (c * tiles_per_split + i, 0)      # noqa: E731
    const_map = lambda c, i: (0, 0)                          # noqa: E731
    hop_sem = ("parallel", "arbitrary")                      # split-axis parallel, N reduce

    # ---- hop 0 front half: t0 = inv_col * sum_tiles adj^T @ (x @ W0) ----------
    h1 = dims_pad[1]
    part = pl.pallas_call(
        _hop0_kernel,
        grid=(NUM_SPLITS, tiles_per_split),
        in_specs=[
            pl.BlockSpec((tile_n, f_pad), row_map),
            pl.BlockSpec((tile_n, a_pad), row_map),
            pl.BlockSpec((f_pad, h1), const_map),            # resident weight
        ],
        out_specs=pl.BlockSpec((None, a_pad, h1), lambda c, i: (c, 0, 0)),
        out_shape=jax.ShapeDtypeStruct((NUM_SPLITS, a_pad, h1), jnp.float32),
        compiler_params=pltpu.CompilerParams(
            dimension_semantics=hop_sem,
            vmem_limit_bytes=_vmem_limit(
                tile_n * (f_pad + a_pad) * 2,
                f_pad * h1 * 2 + 2 * a_pad * h1 * 4)),
        cost_estimate=_cost(
            2 * n_pad * h1 * (f_pad + a_pad),
            n_pad * (f_pad + a_pad) * 2 + f_pad * h1 * 2 + NUM_SPLITS * a_pad * h1 * 4),
    )(x_bf, adj_bf, w_bf[0])
    t = inv_col_p * jnp.sum(part, axis=0)                    # (A_pad, h1) f32, tiny

    # ---- middle hops: fuse map(l-1) + contract(l) per node tile ---------------
    for l in range(1, num_layers):
        h_in, h_out = dims_pad[l], dims_pad[l + 1]
        part = pl.pallas_call(
            _hop_mid_kernel,
            grid=(NUM_SPLITS, tiles_per_split),
            in_specs=[
                pl.BlockSpec((tile_n, a_pad), row_map),
                pl.BlockSpec((tile_n, 1), row_map),
                pl.BlockSpec((a_pad, h_in), const_map),      # resident t_{l-1}
                pl.BlockSpec((h_in, h_out), const_map),      # resident weight
            ],
            out_specs=pl.BlockSpec((None, a_pad, h_out), lambda c, i: (c, 0, 0)),
            out_shape=jax.ShapeDtypeStruct((NUM_SPLITS, a_pad, h_out), jnp.float32),
            compiler_params=pltpu.CompilerParams(
                dimension_semantics=hop_sem,
                vmem_limit_bytes=_vmem_limit(
                    tile_n * a_pad * 2 + tile_n * LANE * 4,
                    (a_pad * h_in + h_in * h_out) * 2 + 2 * a_pad * h_out * 4)),
            cost_estimate=_cost(
                2 * n_pad * (a_pad * h_in + h_in * h_out + a_pad * h_out),
                n_pad * a_pad * 2 + n_pad * 4
                + (a_pad * h_in + h_in * h_out) * 2 + NUM_SPLITS * a_pad * h_out * 4),
        )(adj_bf, inv_row_p, t.astype(jnp.bfloat16), w_bf[l])
        t = inv_col_p * jnp.sum(part, axis=0)                # (A_pad, h_out) f32

    # ---- final map: out = inv_row * (adj @ t_last), lane-dense padded store ---
    out_pad = pl.pallas_call(
        _final_kernel,
        grid=(num_tiles,),
        in_specs=[
            pl.BlockSpec((tile_n, a_pad), lambda i: (i, 0)),
            pl.BlockSpec((tile_n, 1), lambda i: (i, 0)),
            pl.BlockSpec((a_pad, c_pad), lambda i: (0, 0)),  # resident t_last
        ],
        out_specs=pl.BlockSpec((tile_n, c_pad), lambda i: (i, 0)),
        out_shape=jax.ShapeDtypeStruct((n_pad, c_pad), jnp.float32),
        compiler_params=pltpu.CompilerParams(
            dimension_semantics=("parallel",),
            vmem_limit_bytes=_vmem_limit(
                tile_n * a_pad * 2 + tile_n * LANE * 4 + tile_n * c_pad * 4,
                a_pad * c_pad * 2)),
        cost_estimate=_cost(
            2 * n_pad * a_pad * c_pad,
            n_pad * a_pad * 2 + n_pad * 4 + a_pad * c_pad * 2 + n_pad * c_pad * 4),
    )(adj_bf, inv_row_p, t.astype(jnp.bfloat16))

    return out_pad[:N, :nclass]


# --------------------------------------------------------------------------- #
# Reference (pure JAX, f32) and parameter init mirroring the PyTorch module
# --------------------------------------------------------------------------- #
def anchor_gcn_reference(x, adj, weights):
    row_sum = jnp.sum(adj, axis=-1, keepdims=True)
    col_sum = jnp.sum(adj, axis=-2, keepdims=True)
    node_norm = adj / jnp.maximum(col_sum, VERY_SMALL_NUMBER)
    anchor_norm = adj / jnp.maximum(row_sum, VERY_SMALL_NUMBER)
    h = x
    out = None
    for l, w in enumerate(weights):
        support = h @ w
        out = anchor_norm @ (node_norm.T @ support)
        if l < len(weights) - 1:
            out = jax.nn.relu(out)
            h = out
    return out


def xavier_uniform(key, shape):
    fan_in, fan_out = shape
    bound = math.sqrt(6.0 / (fan_in + fan_out))
    return jax.random.uniform(key, shape, jnp.float32, -bound, bound)


def make_anchor_gcn_params(key, nfeat, nhid, nclass, graph_hops):
    """Deterministic parameter init mirroring AnchorGCN.__init__ (bias=False)."""
    dims = [nfeat] + [nhid] * (graph_hops - 1) + [nclass]
    keys = jax.random.split(key, len(dims) - 1)
    return [xavier_uniform(k, (dims[i], dims[i + 1])) for i, k in enumerate(keys)]


if __name__ == "__main__":
    # Small synthetic problem: N nodes, A anchors (real workloads: large N).
    N, A = 64, 16
    nfeat, nhid, nclass, graph_hops = 32, 32, 8, 3

    key = jax.random.PRNGKey(0)
    kx, kadj, kp = jax.random.split(key, 3)

    x = jax.random.normal(kx, (N, nfeat), jnp.float32)
    # Non-negative node-anchor adjacency (soft assignment matrix).
    node_anchor_adj = jax.nn.softmax(
        jax.random.normal(kadj, (N, A), jnp.float32), axis=-1)
    weights = make_anchor_gcn_params(kp, nfeat, nhid, nclass, graph_hops)

    out = anchor_gcn_forward(x, node_anchor_adj, weights)
    out = jax.block_until_ready(out)
    assert out.shape == (N, nclass)
    assert bool(jnp.isfinite(out).all())

    # bf16-streamed operands with f32 accumulation: allow small relative drift.
    ref = anchor_gcn_reference(x, node_anchor_adj, weights)
    err = float(jnp.max(jnp.abs(out - ref)))
    scale = float(jnp.max(jnp.abs(ref))) + 1e-6
    assert err <= 5e-2 * scale + 1e-3, (err, scale)

    print("KERNEL_OK")
</pallas_src>

<mosaic_0001>
module attributes {stable_mosaic.version = 11 : i64} {
  func.func @_hop0_kernel(%arg0: i32, %arg1: i32, %arg2: memref<128x128xbf16, #tpu.memory_space<vmem>>, %arg3: memref<128x128xbf16, #tpu.memory_space<vmem>>, %arg4: memref<128x128xbf16, #tpu.memory_space<vmem>>, %arg5: memref<1x128x128xf32, #tpu.memory_space<vmem>>) attributes {dimension_semantics = [#tpu.dimension_semantics<parallel>, #tpu.dimension_semantics<arbitrary>], iteration_bounds = array<i64: 2, 1>, scalar_prefetch = 0 : i64, scratch_operands = 0 : i64, tpu.core_type = #tpu.core_type<tc>, window_params = [{transform_indices = @transform_0, window_bounds = array<i64: 128, 128>}, {transform_indices = @transform_1, window_bounds = array<i64: 128, 128>}, {pipeline_mode = #tpu.pipeline_mode<synchronous>, transform_indices = @transform_2, window_bounds = array<i64: 128, 128>}, {transform_indices = @transform_3, window_bounds = array<i64: 1, 128, 128>}]} {
    %c0_i32 = arith.constant 0 : i32
    %0 = arith.cmpi eq, %arg1, %c0_i32 : i32
    %1 = arith.extui %0 : i1 to i32
    %c0_i32_0 = arith.constant 0 : i32
    %2 = arith.cmpi ne, %1, %c0_i32_0 : i32
    scf.if %2 {
      %cst_13 = arith.constant 0.000000e+00 : f32
      %15 = vector.broadcast %cst_13 : f32 to vector<128x128xf32>
      %c0_14 = arith.constant 0 : index
      %c0_15 = arith.constant 0 : index
      %c0_16 = arith.constant 0 : index
      %16 = vector.load %arg5[%c0_14, %c0_15, %c0_16] : memref<1x128x128xf32, #tpu.memory_space<vmem>>, vector<1x128x128xf32>
      %17 = vector.shape_cast %16 : vector<1x128x128xf32> to vector<128x128xf32>
      %18 = vector.shape_cast %15 : vector<128x128xf32> to vector<1x128x128xf32>
      tpu.vector_store %arg5[%c0_14, %c0_15, %c0_16], %18 {strides = array<i32>} : memref<1x128x128xf32, #tpu.memory_space<vmem>>, vector<1x128x128xf32>,
    } else {
    }
    %c0 = arith.constant 0 : index
    %c0_1 = arith.constant 0 : index
    %3 = vector.load %arg2[%c0, %c0_1] : memref<128x128xbf16, #tpu.memory_space<vmem>>, vector<128x128xbf16>
    %c0_2 = arith.constant 0 : index
    %c0_3 = arith.constant 0 : index
    %4 = vector.load %arg4[%c0_2, %c0_3] : memref<128x128xbf16, #tpu.memory_space<vmem>>, vector<128x128xbf16>
    %cst = arith.constant dense<0.000000e+00> : vector<128x128xf32>
    %5 = tpu.matmul %3, %4, %cst {dimension_numbers = #tpu.dot_dimension_numbers<[1], [0], [0], [1], [0, 0, 1, 1], [], []>} : vector<128x128xbf16>, vector<128x128xbf16>, vector<128x128xf32> -> vector<128x128xf32>
    %c0_4 = arith.constant 0 : index
    %c0_5 = arith.constant 0 : index
    %c0_6 = arith.constant 0 : index
    %6 = vector.load %arg5[%c0_4, %c0_5, %c0_6] : memref<1x128x128xf32, #tpu.memory_space<vmem>>, vector<1x128x128xf32>
    %7 = vector.shape_cast %6 : vector<1x128x128xf32> to vector<128x128xf32>
    %c0_7 = arith.constant 0 : index
    %c0_8 = arith.constant 0 : index
    %8 = vector.load %arg3[%c0_7, %c0_8] : memref<128x128xbf16, #tpu.memory_space<vmem>>, vector<128x128xbf16>
    %9 = arith.truncf %5 : vector<128x128xf32> to vector<128x128xbf16>
    %cst_9 = arith.constant dense<0.000000e+00> : vector<128x128xf32>
    %10 = tpu.matmul %8, %9, %cst_9 {dimension_numbers = #tpu.dot_dimension_numbers<[0], [0], [1], [1], [0, 1, 1, 1], [], []>} : vector<128x128xbf16>, vector<128x128xbf16>, vector<128x128xf32> -> vector<128x128xf32>
    %11 = arith.addf %7, %10 : vector<128x128xf32>
    %c0_10 = arith.constant 0 : index
    %c0_11 = arith.constant 0 : index
    %c0_12 = arith.constant 0 : index
    %12 = vector.load %arg5[%c0_10, %c0_11, %c0_12] : memref<1x128x128xf32, #tpu.memory_space<vmem>>, vector<1x128x128xf32>
    %13 = vector.shape_cast %12 : vector<1x128x128xf32> to vector<128x128xf32>
    %14 = vector.shape_cast %11 : vector<128x128xf32> to vector<1x128x128xf32>
    tpu.vector_store %arg5[%c0_10, %c0_11, %c0_12], %14 {strides = array<i32>} : memref<1x128x128xf32, #tpu.memory_space<vmem>>, vector<1x128x128xf32>,
    return
  }
  func.func @transform_0(%arg0: i32, %arg1: i32) -> (i32, i32) {
    %c1_i32 = arith.constant 1 : i32
    %0 = arith.muli %arg0, %c1_i32 : i32
    %1 = arith.addi %0, %arg1 : i32
    %c0_i32 = arith.constant 0 : i32
    %c0_i32_0 = arith.constant 0 : i32
    return %1, %c0_i32 : i32, i32
  }
  func.func @transform_1(%arg0: i32, %arg1: i32) -> (i32, i32) {
    %c1_i32 = arith.constant 1 : i32
    %0 = arith.muli %arg0, %c1_i32 : i32
    %1 = arith.addi %0, %arg1 : i32
    %c0_i32 = arith.constant 0 : i32
    %c0_i32_0 = arith.constant 0 : i32
    return %1, %c0_i32 : i32, i32
  }
  func.func @transform_2(%arg0: i32, %arg1: i32) -> (i32, i32) {
    %c0_i32 = arith.constant 0 : i32
    %c0_i32_0 = arith.constant 0 : i32
    %c0_i32_1 = arith.constant 0 : i32
    return %c0_i32, %c0_i32_0 : i32, i32
  }
  func.func @transform_3(%arg0: i32, %arg1: i32) -> (i32, i32, i32) {
    %c0_i32 = arith.constant 0 : i32
    %c0_i32_0 = arith.constant 0 : i32
    %c0_i32_1 = arith.constant 0 : i32
    return %arg0, %c0_i32, %c0_i32_0 : i32, i32, i32
  }
}

</mosaic_0001>

<bundles_post_ra>
// kernel: tpu_custom_call.1
= control target key start
LH: loop header
LB: loop body
LE: loop exit
PB: predicated region body
PF: predicated region fallthrough
CT: control target
= control target key end

     0   :  { %s1570_s0 = inlined_call_operand.hbm [shape: bf16[256,128], index: 0, kind: input, shape index: {}]   ;;  %s1571_s1 = inlined_call_operand.hbm [shape: bf16[256,128], index: 1, kind: input, shape index: {}]   ;;  %s1572_s2 = inlined_call_operand.hbm [shape: bf16[128,128], index: 2, kind: input, shape index: {}]   ;;  %s1573_s3 = inlined_call_operand.hbm [shape: f32[2,128,128], index: 3, kind: output, shape index: {}]  }
   0x1   :  { %1579 = sst [smem:[#allocation14_spill]] %s1572_s2 }
   0x2   :  { %8 = vsyncpa [#allocation3], 0 }
   0x3   :  { %10 = vsyncpa [#allocation3 + $0x1], 0 }
   0x4   :  { %11 = vsyncpa [#allocation6], 0 }
   0x5   :  { %13 = vsyncpa [#allocation6 + $0x1], 0 }
   0x6   :  { %14 = vsyncpa [#allocation4], 0 }
   0x7   :  { %16 = vsyncpa [#allocation4 + $0x1], 0  ;;  %s1324_s12 = smov 0   ;;  %s1326_s13 = smov 0  }
   0x8   :  { %s1328_s14 = smov 0   ;;  %s1330_s15 = smov 0  }
   0x9   :  { %s1332_s16 = smov 0   ;;  %s1334_s17 = smov 0  }
   0xa LB: > { %s1355_s18 = sadd.s32 4294967295, %s1294_s17   ;;  %s874_s19 = sadd.s32 4294967294, %s1294_s17   ;;  %s1294_s17 = sphi %s1334_s17, %s22_s17   ;;  %s1290_s16 = sphi %s1332_s16, %s1599_s16   ;;  %s1286_s15 = sphi %s1330_s15, %s1598_s15   ;;  %s1282_s14 = sphi %s1328_s14, %s1597_s14   ;;  %s1278_s13 = sphi %s1326_s13, %s1596_s13   ;;  %s1274_s12 = sphi %s1324_s12, %s1595_s12  }
   0xb   : > { %p56_p0 = scmp.ne.s32.totalorder %s1278_s13, %s1274_s12  ;;  %p57_p1 = scmp.eq.s32.totalorder %s1355_s18, 0 }
   0xc   : > { %p135_p3 = scmp.eq.s32.totalorder %s874_s19, 1  ;;  %p875_p5 = scmp.ge.s32.totalorder %s1294_s17, 1 }
   0xd   : > { %p1364_p4 = por %p57_p1, %p56_p0  ;;  %p142_p7 = scmp.lt.s32.totalorder %s1294_s17, 3 }
   0xe   : > { %p1369_p6 = por %p135_p3, %p56_p0  ;;  %s1296_s23 = smov [#allocation7]  }
   0xf   : > { %p1374_p8 = pnand %p875_p5, %p142_p7  ;;  %s154_s24 = sshll.u32 %s1296_s23, 4  ;;  %s155_s24 = int_to_ptr.vmem [resolvable:$true] %s154_s24 }
  0x10   : > { %s1581_s21 = scalar_select %p1369_p6, 1, 0 }
  0x11   : > { %p1027_p9 = pneg %p1374_p8  ;;  %s34_s26 = sadd.s32 1, %s1290_s16 }
  0x12   : > { %s1135_s27 = scalar_lea.vmem %s155_s24, 1024  ;;  %p1143_p5 = scmp.lt.s32.totalorder %s155_s24, %s155_s24 }
  0x13   : > { %p1383_p11 = pnand %p1027_p9, %p57_p1  ;;  %p1136_p13 = scmp.ne.s32.totalorder %s155_s24, %s1135_s27 }
  0x14   : > { %p1144_p7 = scmp.lt.s32.totalorder %s1135_s27, %s1135_s27 }
  0x15   : > { %p1126_p12 = pneg %p1383_p11 }
  0x16   : > { %p1145_p2 = por %p1144_p7, %p1143_p5 }
  0x17   : > { %p1138_p0 = pnand %p1136_p13, %p1126_p12 }
  0x19   : > { %p1139_p3 = pneg %p1138_p0 }
  0x1b   : > { %p1146_p6 = pnand %p1145_p2, %p1139_p3 }
  0x1d   : > { %1149 = shalt.err (!%p1146_p6)
}
  0x1e   : > { %s1574_s28 = smov 64   ;;  %s1576_s29 = smov 4  }
  0x1f   : > { %s1584_s2 = sld [smem:[#allocation14_spill]]  ;;  %p36_p2 = scmp.ge.s32.totalorder %s34_s26, 2 }
  0x20   : > { %s43_s5 = sadd.s32 1, %s1282_s14  ;;  %p50_p6 = scmp.ne.s32.totalorder %s1282_s14, %s1278_s13 }
  0x21   : > { %p51_p9 = scmp.eq.s32.totalorder %s1294_s17, 0  ;;  %s1601_s26 = smov (%p36_p2, %s34_s26), 0 }
  0x22   : > { %1585 = sst [smem:[#allocation13_spill]] %s1601_s26  ;;  %p1587_p13 = scmp.eq.s32.totalorder %s1355_s18, 1 }
  0x23   : > { %p1404_p12 = por %p51_p9, %p50_p6  ;;  %s40_s8 = ssub.s32 %s1290_s16, %s1601_s26 }
  0x24   : > { %p1410_p0 = por %p1587_p13, %p50_p6  ;;  %p1043_p3 = scmp.lt.s32.totalorder %s1294_s17, 2 }
  0x25   : > { %1030 = dma.hbm_to_vmem [thread:$0]  (!%p1383_p11), %s1584_s2, 1024, %s155_s24, [#allocation6], %s1574_s28, %s1574_s28, %s1576_s29  }
  0x26   : > { %p41_p11 = scmp.eq.s32.totalorder %s40_s8, 0  ;;  %s168_s9 = sand.u32 1, %s1282_s14  }
  0x27   : > { %s878_s10 = sshll.u32 %s168_s9, 6  ;;  %s918_s19 = sshll.u32 %s1290_s16, 10 }
  0x28   : > { %s1419_s11 = scalar_select %p41_p11, %s1282_s14, %s43_s5  }
  0x29   : > { %s179_s25 = scalar_lea.hbm %s1570_s0, %s918_s19  ;;  %s172_s27 = scalar_lea.vmem [#allocation2], %s878_s10 }
  0x2a   : > { %s180_s30 = sshll.u32 %s172_s27, 4  ;;  %p1427_p5 = pnand %p1043_p3, %p1404_p12  ;;  %s181_s30 = int_to_ptr.vmem [resolvable:$true] %s180_s30 }
  0x2b   : > { %s1434_s5 = scalar_lea.hbm %s1571_s1, %s918_s19  ;;  %s194_s8 = scalar_lea.vmem [#allocation5], %s878_s10 }
  0x2c   : > { %s202_s2 = sshll.u32 %s194_s8, 4  ;;  %s169_s26 = scalar_lea.sflag [#allocation3], %s168_s9  ;;  %s203_s2 = int_to_ptr.vmem [resolvable:$true] %s202_s2 }
  0x2d   : > { %p1152_p7 = pneg %p1427_p5  ;;  %s1163_s23 = scalar_lea.vmem %s181_s30, 1024 }
  0x2e   : > { %p1164_p2 = scmp.ne.s32.totalorder %s181_s30, %s1163_s23  ;;  %s1299_s6 = smov [#allocation2]  }
  0x2f   : > { %s1168_s24 = sshll.u32 %s1299_s6, 4  ;;  %s1169_s24 = int_to_ptr.vmem [resolvable:$false] %s1168_s24 }
  0x30   : > { %p1166_p6 = pnand %p1164_p2, %p1152_p7  ;;  %s1170_s27 = scalar_lea.vmem %s1169_s24, 2048 }
  0x31   : > { %p1171_p12 = scmp.lt.s32.totalorder %s181_s30, %s1169_s24  ;;  %p1172_p13 = scmp.lt.s32.totalorder %s1170_s27, %s1163_s23 }
  0x32   : > { %p1167_p9 = pneg %p1166_p6 }
  0x33   : > { %p1173_p3 = por %p1172_p13, %p1171_p12 }
  0x35   : > { %p1174_p11 = pnand %p1173_p3, %p1167_p9 }
  0x37   : > { %1177 = shalt.err (!%p1174_p11)
}
  0x38   : > { %s1590_s28 = smov 4   ;;  %s1591_s29 = smov 64  }
  0x39   : > { %1034 = dma.hbm_to_vmem [thread:$0]  (!%p1427_p5), %s179_s25, 1024, %s181_s30, %s169_s26, %s1591_s29, %s1591_s29, %s1590_s28  }
  0x3a   : > { %s190_s9 = sand.u32 1, %s1294_s17   ;;  %s1191_s19 = scalar_lea.vmem %s203_s2, 1024 }
  0x3b   : > { %s191_s10 = scalar_lea.sflag [#allocation6], %s190_s9  ;;  %p1192_p2 = scmp.ne.s32.totalorder %s203_s2, %s1191_s19 }
  0x3c   : > { %s1300_s8 = smov [#allocation5]  }
  0x3d   : > { %p1194_p6 = pnand %p1192_p2, %p1152_p7  ;;  %s1196_s23 = sshll.u32 %s1300_s8, 4  ;;  %s1197_s23 = int_to_ptr.vmem [resolvable:$false] %s1196_s23 }
  0x3e   : > { %s1198_s6 = scalar_lea.vmem %s1197_s23, 2048  ;;  %p1199_p9 = scmp.lt.s32.totalorder %s203_s2, %s1197_s23 }
  0x3f   : > { %p1195_p10 = pneg %p1194_p6  ;;  %p1200_p12 = scmp.lt.s32.totalorder %s1198_s6, %s1191_s19 }
  0x41   : > { %p1201_p13 = por %p1200_p12, %p1199_p9 }
  0x43   : > { %p1202_p3 = pnand %p1201_p13, %p1195_p10 }
  0x45   : > { %1205 = shalt.err (!%p1202_p3)
}
  0x46   : > { %1037 = dma.hbm_to_vmem [thread:$0]  (!%p1427_p5), %s1434_s5, 1024, %s203_s2, %s191_s10, %s1591_s29, %s1591_s29, %s1590_s28  }
  0x47   : > { %214 = sbr.rel (%p1374_p8) target bundleno = 607 (0x25f), region = 32  ;;  %s1459_s26 = sand.u32 (!%p1374_p8), 1, %s1278_s13  }
  0x48   : > { %s885_s25 = sshll.u32 (!%p1374_p8), %s1459_s26, 6  ;;  %s217_s30 = scalar_lea.sflag (!%p1374_p8), [#allocation3], %s1459_s26 }
  0x49   : > { %s1463_s24 = scalar_lea.vmem (!%p1374_p8), [#allocation2], %s885_s25 }
  0x4c   : > { %1257 = dma.done.wait (%p1364_p4), %s217_s30, 1024  }
  0x4d   : > { %1259 = vsyncadd (%p1364_p4), %s217_s30, 4294966272  ;;  %s225_s2 = sand.u32 1, %s1355_s18   ;;  %s1470_s4 = scalar_lea.vmem [#allocation5], %s885_s25 }
  0x4e   : > { %s226_s22 = scalar_lea.sflag [#allocation6], %s225_s2 }
  0x4f   : > { %1261 = dma.done.wait (%p1364_p4), %s226_s22, 1024  }
  0x50   : > { %1263 = vsyncadd (%p1364_p4), %s226_s22, 4294966272 }
  0x51   : > { %1265 = dma.done.wait (%p57_p1), [#allocation6], 1024  }
  0x52   : > { %1267 = vsyncadd (%p57_p1), [#allocation6], 4294966272  ;;  %v1100_v0 = vld [vmem:[#allocation7 + $0x38] sm:$0xff]   ;;  %v1101_v1 = vld [vmem:[#allocation7 + $0x30] sm:$0xff]   ;;  %s888_s18 = sshll.u32 %s1459_s26, 7  ;;  %s920_s5 = sshll.u32 %s1286_s15, 11 }
  0x53   : > { %953 = vmatprep.subr.bf16.mxu0 %v1100_v0  ;;  %v1102_v2 = vld [vmem:[#allocation7 + $0x28] sm:$0xff]   ;;  %v1103_v3 = vld [vmem:[#allocation7 + $0x20] sm:$0xff]   ;;  %v1104_v5 = vld [vmem:[#allocation7 + $0x18] sm:$0xff]   ;;  %s1497_s20 = scalar_lea.vmem [#allocation8], %s888_s18  ;;  %s1518_s9 = scalar_lea.hbm %s1573_s3, %s920_s5 }
  0x54   : > { %954 = vmatpush3.bf16.msra.mxu0 %v1100_v0  ;;  %v1108_v4 = vld [vmem:[%s1463_s24] sm:$0xff]   ;;  %v1105_v6 = vld [vmem:[#allocation7 + $0x10] sm:$0xff]   ;;  %v1117_v8 = vld [vmem:[%s1470_s4 + $0x8] sm:$0xff]   ;;  %s758_s27 = sshll.u32 %s1497_s20, 4  ;;  %s745_s10 = scalar_lea.sflag [#allocation4], %s1459_s26  ;;  %s1520_s27 = int_to_ptr.vmem [resolvable:$true] %s758_s27 }
  0x55   : > { %955 = vmatprep.subr.bf16.mxu0 %v1101_v1  ;;  %969 = vmatprep.mubr.bf16.mxu0 %v1108_v4  ;;  %v1116_v7 = vld [vmem:[%s1470_s4] sm:$0xff]   ;;  %v1106_v9 = vld [vmem:[#allocation7 + $0x8] sm:$0xff]   ;;  %v1118_v10 = vld [vmem:[%s1470_s4 + $0x10] sm:$0xff]   ;;  %s1206_s19 = scalar_lea.vmem %s1520_s27, 2048  ;;  %s1301_s15 = smov [#allocation8]  }
  0x56   : > { %599 = vxpose.xlu0.c.b16.start [1/8] %v1116_v7, 128  ;;  %v1107_v11 = vld [vmem:[#allocation7] sm:$0xff]   ;;  %v1119_v12 = vld [vmem:[%s1470_s4 + $0x18] sm:$0xff]   ;;  %v1109_v13 = vld [vmem:[%s1463_s24 + $0x8] sm:$0xff]   ;;  %p1207_p1 = scmp.ne.s32.totalorder %s1520_s27, %s1206_s19  ;;  %s1210_s8 = sshll.u32 %s1301_s15, 4  ;;  %s1211_s8 = int_to_ptr.vmem [resolvable:$false] %s1210_s8 }
  0x57   : > { %v1120_v14 = vld [vmem:[%s1470_s4 + $0x20] sm:$0xff]   ;;  %v1110_v15 = vld [vmem:[%s1463_s24 + $0x10] sm:$0xff]   ;;  %v1121_v16 = vld [vmem:[%s1470_s4 + $0x28] sm:$0xff]   ;;  %s1212_s23 = scalar_lea.vmem %s1211_s8, 4096  ;;  %p1213_p10 = scmp.lt.s32.totalorder %s1520_s27, %s1211_s8 }
  0x58   : > { %956 = vmatpush3.bf16.msra.mxu0 %v1101_v1  ;;  %v1111_v17 = vld [vmem:[%s1463_s24 + $0x18] sm:$0xff]   ;;  %v1122_v18 = vld [vmem:[%s1470_s4 + $0x30] sm:$0xff]   ;;  %v1112_v19 = vld [vmem:[%s1463_s24 + $0x20] sm:$0xff]   ;;  %p1208_p4 = pnand %p1207_p1, %p1410_p0  ;;  %p1214_p5 = scmp.lt.s32.totalorder %s1212_s23, %s1206_s19 }
  0x59   : > { %957 = vmatprep.subr.bf16.mxu0 %v1102_v2  ;;  %v1123_v20 = vld [vmem:[%s1470_s4 + $0x38] sm:$0xff]   ;;  %v1113_v21 = vld [vmem:[%s1463_s24 + $0x28] sm:$0xff]   ;;  %v1114_v22 = vld [vmem:[%s1463_s24 + $0x30] sm:$0xff]  }
  0x5a   : > { %600 = vxpose.xlu0.c.b16.cont [2/8] %v1117_v8, 128  ;;  %v1115_v23 = vld [vmem:[%s1463_s24 + $0x38] sm:$0xff]   ;;  %p1209_p8 = pneg %p1208_p4  ;;  %p1215_p7 = por %p1214_p5, %p1213_p10 }
  0x5c   : > { %958 = vmatpush3.bf16.msra.mxu0 %v1102_v2  ;;  %p1216_p11 = pnand %p1215_p7, %p1209_p8 }
  0x5d   : > { %959 = vmatprep.subr.bf16.mxu0 %v1103_v3 }
  0x5e   : > { %601 = vxpose.xlu0.c.b16.cont [3/8] %v1118_v10, 128 }
  0x60   : > { %960 = vmatpush3.bf16.msra.mxu0 %v1103_v3 }
  0x61   : > { %961 = vmatprep.subr.bf16.mxu0 %v1104_v5 }
  0x62   : > { %602 = vxpose.xlu0.c.b16.cont [4/8] %v1119_v12, 128 }
  0x64   : > { %962 = vmatpush3.bf16.msra.mxu0 %v1104_v5 }
  0x65   : > { %963 = vmatprep.subr.bf16.mxu0 %v1105_v6 }
  0x66   : > { %603 = vxpose.xlu0.c.b16.cont [5/8] %v1120_v14, 128 }
  0x68   : > { %964 = vmatpush3.bf16.msra.mxu0 %v1105_v6 }
  0x69   : > { %965 = vmatprep.subr.bf16.mxu0 %v1106_v9 }
  0x6a   : > { %604 = vxpose.xlu0.c.b16.cont [6/8] %v1121_v16, 128 }
  0x6c   : > { %966 = vmatpush3.bf16.msra.mxu0 %v1106_v9 }
  0x6d   : > { %967 = vmatprep.subr.bf16.mxu0 %v1107_v11 }
  0x6e   : > { %605 = vxpose.xlu0.c.b16.cont [7/8] %v1122_v18, 128 }
  0x70   : > { %968 = vmatpush3.bf16.msra.mxu0 %v1107_v11 }
  0x72   : > { %606 = vxpose.xlu0.c.b16.end [8/8] %v1123_v20, 128 }
  0x73   : > { %970 = vmatmul.mubr.bf16.vlgmr.msra.gmra.mxu0 %v1109_v13 }
  0x74   : > { %973 = vmatprep.mubr.bf16.mxu0 %v1110_v15 }
  0x7b   : > { %974 = vmatmul.mubr.bf16.gmra.mxu0 %v1111_v17 }
  0x7c   : > { %977 = vmatprep.mubr.bf16.mxu0 %v1112_v19 }
  0x83   : > { %978 = vmatmul.mubr.bf16.gmra.mxu0 %v1113_v21 }
  0x84   : > { %981 = vmatprep.mubr.bf16.mxu0 %v1114_v22 }
  0x8b   : > { %982 = vmatmul.mubr.bf16.gmra.mxu0 %v1115_v23 }
  0xb8   : > { %v607_v24 = vpop.trf.xlu0 }
  0xb9   : > { %1001 = vmatprep.mubr.bf16.mxu1 %v607_v24 }
  0xbc   : > { %v608_v47 = vpop.trf.xlu0 }
  0xc0   : > { %v609_v49 = vpop.trf.xlu0 }
  0xc4   : > { %v610_v51 = vpop.trf.xlu0 }
  0xc8   : > { %v611_v52 = vpop.trf.xlu0 }
  0xcc   : > { %v612_v53 = vpop.trf.xlu0 }
  0xd0   : > { %v613_v54 = vpop.trf.xlu0 }
  0xd4   : > { %v614_v55 = vpop.trf.xlu0 }
 0x133   : > { %v971_v25 = vpop.f32.mrf.mxu0 }
 0x135   : > { %v448_v26 = vpop.f32.mrf.mxu0 }
 0x137   : > { %v972_v27 = vpop.f32.mrf.mxu0 }
 0x138   : > { %v544_v48 = vpack.c.bf16 %v972_v27, %v971_v25 }
 0x139   : > { %v451_v28 = vpop.f32.mrf.mxu0 }
 0x13a   : > { %v543_v50 = vpack.c.bf16 %v451_v28, %v448_v26 }
 0x13b   : > { %v975_v29 = vpop.f32.mrf.mxu0 }
 0x13d   : > { %v464_v30 = vpop.f32.mrf.mxu0 }
 0x13f   : > { %v976_v31 = vpop.f32.mrf.mxu0 }
 0x140   : > { %v546_v45 = vpack.c.bf16 %v976_v31, %v975_v29 }
 0x141   : > { %v467_v32 = vpop.f32.mrf.mxu0 }
 0x142   : > { %v545_v46 = vpack.c.bf16 %v467_v32, %v464_v30 }
 0x143   : > { %v979_v33 = vpop.f32.mrf.mxu0 }
 0x145   : > { %v480_v34 = vpop.f32.mrf.mxu0 }
 0x147   : > { %v980_v35 = vpop.f32.mrf.mxu0 }
 0x148   : > { %v548_v43 = vpack.c.bf16 %v980_v35, %v979_v33 }
 0x149   : > { %v483_v36 = vpop.f32.mrf.mxu0 }
 0x14a   : > { %v547_v44 = vpack.c.bf16 %v483_v36, %v480_v34 }
 0x14b   : > { %v983_v37 = vpop.f32.mrf.mxu0 }
 0x14d   : > { %v496_v38 = vpop.f32.mrf.mxu0 }
 0x14f   : > { %v984_v39 = vpop.f32.mrf.mxu0 }
 0x150   : > { %v550_v40 = vpack.c.bf16 %v984_v39, %v983_v37 }
 0x151   : > { %v499_v41 = vpop.f32.mrf.mxu0 }
 0x152   : > { %v549_v42 = vpack.c.bf16 %v499_v41, %v496_v38  ;;  %985 = vmatprep.subr.bf16.mxu1 %v550_v40 }
 0x153   : > { %986 = vmatpush3.bf16.msra.mxu1 %v550_v40 }
 0x154   : > { %987 = vmatprep.subr.bf16.mxu1 %v549_v42 }
 0x157   : > { %988 = vmatpush3.bf16.msra.mxu1 %v549_v42 }
 0x158   : > { %989 = vmatprep.subr.bf16.mxu1 %v548_v43 }
 0x15b   : > { %990 = vmatpush3.bf16.msra.mxu1 %v548_v43 }
 0x15c   : > { %991 = vmatprep.subr.bf16.mxu1 %v547_v44 }
 0x15f   : > { %992 = vmatpush3.bf16.msra.mxu1 %v547_v44 }
 0x160   : > { %993 = vmatprep.subr.bf16.mxu1 %v546_v45 }
 0x163   : > { %994 = vmatpush3.bf16.msra.mxu1 %v546_v45 }
 0x164   : > { %995 = vmatprep.subr.bf16.mxu1 %v545_v46 }
 0x167   : > { %996 = vmatpush3.bf16.msra.mxu1 %v545_v46 }
 0x168   : > { %997 = vmatprep.subr.bf16.mxu1 %v544_v48 }
 0x16b   : > { %998 = vmatpush3.bf16.msra.mxu1 %v544_v48 }
 0x16c   : > { %999 = vmatprep.subr.bf16.mxu1 %v543_v50 }
 0x16f   : > { %1000 = vmatpush3.bf16.msra.mxu1 %v543_v50 }
 0x172   : > { %1002 = vmatmul.mubr.bf16.vlgmr.msra.gmra.mxu1 %v608_v47 }
 0x173   : > { %1005 = vmatprep.mubr.bf16.mxu1 %v609_v49 }
 0x17a   : > { %1006 = vmatmul.mubr.bf16.gmra.mxu1 %v610_v51 }
 0x17b   : > { %1009 = vmatprep.mubr.bf16.mxu1 %v611_v52 }
 0x182   : > { %1010 = vmatmul.mubr.bf16.gmra.mxu1 %v612_v53 }
 0x183   : > { %1013 = vmatprep.mubr.bf16.mxu1 %v613_v54 }
 0x18a   : > { %1014 = vmatmul.mubr.bf16.gmra.mxu1 %v614_v55 }
 0x232   : > { %v1003_v56 = vpop.f32.mrf.mxu1 }
 0x233   : > { %730 = vst [vmem:[%s1497_s20 + $0x10] sm:$0xff] %v1003_v56 }
 0x234   : > { %v649_v57 = vpop.f32.mrf.mxu1 }
 0x235   : > { %728 = vst [vmem:[%s1497_s20] sm:$0xff] %v649_v57 }
 0x236   : > { %v1004_v58 = vpop.f32.mrf.mxu1 }
 0x237   : > { %731 = vst [vmem:[%s1497_s20 + $0x18] sm:$0xff] %v1004_v58 }
 0x238   : > { %v652_v59 = vpop.f32.mrf.mxu1 }
 0x239   : > { %729 = vst [vmem:[%s1497_s20 + $0x8] sm:$0xff] %v652_v59 }
 0x23a   : > { %v1007_v60 = vpop.f32.mrf.mxu1 }
 0x23b   : > { %734 = vst [vmem:[%s1497_s20 + $0x30] sm:$0xff] %v1007_v60 }
 0x23c   : > { %v665_v61 = vpop.f32.mrf.mxu1 }
 0x23d   : > { %732 = vst [vmem:[%s1497_s20 + $0x20] sm:$0xff] %v665_v61 }
 0x23e   : > { %v1008_v62 = vpop.f32.mrf.mxu1 }
 0x23f   : > { %735 = vst [vmem:[%s1497_s20 + $0x38] sm:$0xff] %v1008_v62 }
 0x240   : > { %v668_v63 = vpop.f32.mrf.mxu1 }
 0x241   : > { %733 = vst [vmem:[%s1497_s20 + $0x28] sm:$0xff] %v668_v63 }
 0x242   : > { %v1011_v0 = vpop.f32.mrf.mxu1 }
 0x243   : > { %738 = vst [vmem:[%s1497_s20 + $0x50] sm:$0xff] %v1011_v0 }
 0x244   : > { %v681_v1 = vpop.f32.mrf.mxu1 }
 0x245   : > { %736 = vst [vmem:[%s1497_s20 + $0x40] sm:$0xff] %v681_v1 }
 0x246   : > { %v1012_v2 = vpop.f32.mrf.mxu1 }
 0x247   : > { %739 = vst [vmem:[%s1497_s20 + $0x58] sm:$0xff] %v1012_v2 }
 0x248   : > { %v684_v3 = vpop.f32.mrf.mxu1 }
 0x249   : > { %737 = vst [vmem:[%s1497_s20 + $0x48] sm:$0xff] %v684_v3 }
 0x24a   : > { %v1015_v4 = vpop.f32.mrf.mxu1 }
 0x24b   : > { %742 = vst [vmem:[%s1497_s20 + $0x70] sm:$0xff] %v1015_v4 }
 0x24c   : > { %v697_v5 = vpop.f32.mrf.mxu1 }
 0x24d   : > { %740 = vst [vmem:[%s1497_s20 + $0x60] sm:$0xff] %v697_v5 }
 0x24e   : > { %v1016_v6 = vpop.f32.mrf.mxu1 }
 0x24f   : > { %743 = vst [vmem:[%s1497_s20 + $0x78] sm:$0xff] %v1016_v6 }
 0x250   : > { %v700_v7 = vpop.f32.mrf.mxu1 }
 0x251   : > { %741 = vst [vmem:[%s1497_s20 + $0x68] sm:$0xff] %v700_v7 }
 0x252   : > { %1219 = shalt.err (!%p1216_p11)
}
 0x253   : > { %s1220_s6 = scalar_lea.hbm %s1518_s9, 2048  ;;  %s1224_s24 = scalar_lea.hbm %s1573_s3, 4096 }
 0x254   : > { %p1221_p2 = scmp.ne.s32.totalorder %s1518_s9, %s1220_s6  ;;  %p1225_p12 = scmp.lt.s32.totalorder %s1518_s9, %s1573_s3 }
 0x255   : > { %p1226_p13 = scmp.lt.s32.totalorder %s1224_s24, %s1220_s6 }
 0x256   : > { %p1222_p6 = pnand %p1221_p2, %p1410_p0 }
 0x257   : > { %p1227_p3 = por %p1226_p13, %p1225_p12 }
 0x258   : > { %p1223_p9 = pneg %p1222_p6 }
 0x25a   : > { %p1228_p1 = pnand %p1227_p3, %p1223_p9 }
 0x25c   : > { %1231 = shalt.err (!%p1228_p1)
}
 0x25d   : > { %s1302_s4 = smov 128   ;;  %s1303_s18 = smov 8  }
 0x25e   : > { %1025 = dma.vmem_to_hbm [thread:$0]  (%p1410_p0), %s1520_s27, 2048, %s1518_s9, %s745_s10, %s1302_s4, %s1302_s4, %s1303_s18  }
 0x25f PF: > { %s773_s20 = sand.u32 1, %s1274_s12   ;;  %p1592_p4 = scmp.ne.s32.totalorder %s1581_s21, 0 }
 0x260   : > { %p1593_p8 = scmp.ge.s32.totalorder %s1294_s17, 2  ;;  %s774_s5 = scalar_lea.sflag [#allocation4], %s773_s20 }
 0x262   : > { %p1039_p10 = pnand %p1593_p8, %p1592_p4 }
 0x264   : > { %p1040_p5 = pneg %p1039_p10 }
 0x266   : > { %1269 = dma.done.wait (%p1040_p5), %s774_s5, 2048  }
 0x267   : > { %1271 = vsyncadd (%p1040_p5), %s774_s5, 4294965248  ;;  %s22_s17 = sadd.s32 1, %s1294_s17   ;;  %s1594_s7 = sld [smem:[#allocation13_spill]] }
 0x268   : > { %p19_p7 = scmp.ge.s32.totalorder %s22_s17, 4   ;;  %s1595_s12 = smov %s1278_s13 }
 0x269   : > { %s1596_s13 = smov %s1282_s14  ;;  %s1597_s14 = smov %s1419_s11 }
 0x26a   : > { %s1598_s15 = smov %s1290_s16  ;;  %21 = sbr.rel (!%p19_p7) target bundleno = 10 (0xa), region = 98 }
 0x26d   : > { %s1599_s16 = smov %s1594_s7 }
 0x26f   :  { %779 = vsyncpa [#allocation3], 1 }
 0x270   :  { %781 = vsyncpa [#allocation3 + $0x1], 1 }
 0x271   :  { %782 = vsyncpa [#allocation6], 1 }
 0x272   :  { %784 = vsyncpa [#allocation6 + $0x1], 1 }
 0x273   :  { %785 = vsyncpa [#allocation4], 1 }
 0x274   :  { %787 = vsyncpa [#allocation4 + $0x1], 1 }

</bundles_post_ra>
